<compile_context>
chip_gen: v7x
topology: tpu7x:2x2x1
jax: 0.10.0
libtpu: 0.0.40
codegen_flags: <defaults>
</compile_context>

<pallas_src>
import functools
import math

import jax
import jax.numpy as jnp
from jax.experimental import pallas as pl
from jax.experimental.pallas import tpu as pltpu


def _round_up(x, m):
    return ((x + m - 1) // m) * m


def _vmem_capacity_bytes():
    try:
        return int(pltpu.get_tpu_info().vmem_capacity_bytes)
    except Exception:
        return 64 * 1024 * 1024          # v7x physical VMEM (most restrictive)


def _mxu_contraction_depth():
    # v6e / v7x: 2x256^2 MXU (256-deep); v2-v5: 128-deep.
    try:
        kind = jax.devices()[0].device_kind.lower()
    except Exception:
        return 256
    return 256 if ("v6" in kind or "v7" in kind) else 128


def _fused_conv1d_stack_kernel(x_ref, *refs, ksize, n_layers, c_pad, tl, win,
                               rows, compute_dtype, fold_flags):
    """One (batch, L-tile) grid step of the fused valid-conv1d stack.

    x_ref : (L_need, K*C_in) VMEM view of this batch element's im2col'd seq.
    refs  : w_0 .. w_{n-1}, b_stack, o_ref, act scratch (0-2), slab scratch (0-1)
       w_0 : (K*C_in, c_pad)
       w_l : (K*c_pad, c_pad) if folded else (K, c_pad, c_pad)
       b   : (n_layers, 1, c_pad) f32
       o   : (tl, c_pad)
    """
    w_refs = refs[:n_layers]
    b_ref = refs[n_layers]
    o_ref = refs[n_layers + 1]
    scratch = refs[n_layers + 2:]
    n_act = min(2, n_layers - 1)
    act_refs = scratch[:n_act]
    slab_ref = scratch[n_act] if any(fold_flags[1:]) else None

    start = pl.multiple_of(pl.program_id(1) * tl, 8)

    # Layer 0: the K taps were folded into the input channels in the wrapper,
    # so this is a single MXU dot of contraction depth K*C_in.
    xw = x_ref[pl.ds(start, win), :].astype(compute_dtype)
    h = jnp.dot(xw, w_refs[0][...], preferred_element_type=jnp.float32)
    h = h + b_ref[0]                                       # f32 bias epilogue
    if n_layers == 1:
        o_ref[...] = h.astype(o_ref.dtype)
        return
    act_refs[0][:rows[0], :] = h.astype(compute_dtype)

    for l in range(1, n_layers):
        r = rows[l]
        prev = act_refs[(l - 1) % 2]
        if fold_flags[l]:
            # im2col fold (only when K*c_pad improves MXU fill): slab is built
            # by copying shifted windows out of the VMEM activation ref.
            for k in range(ksize):
                slab_ref[:r, k * c_pad:(k + 1) * c_pad] = prev[k:k + r, :]
            acc = jnp.dot(slab_ref[:r, :ksize * c_pad], w_refs[l][...],
                          preferred_element_type=jnp.float32)
        else:
            # K accumulated dots streaming shifted windows straight from the
            # activation scratch (no slab traffic; MRB accumulate on v7x).
            acc = jnp.dot(prev[0:r, :], w_refs[l][0],
                          preferred_element_type=jnp.float32)
            for k in range(1, ksize):
                acc = acc + jnp.dot(prev[k:k + r, :], w_refs[l][k],
                                    preferred_element_type=jnp.float32)
        h = acc + b_ref[l]
        if l == n_layers - 1:
            o_ref[...] = h.astype(o_ref.dtype)
        else:
            act_refs[l % 2][:r, :] = h.astype(compute_dtype)


def fused_conv1d_stack(x_nlc, w0_folded, hidden_weights, bias_stack, *, ksize,
                       c_pad, compute_dtype, fold_hidden=None, tl_max=512,
                       interpret=False):
    """x_nlc: (B, L, C_in).  Returns (B, L_out, c_pad) (channels lane-padded)."""
    B, L_in, C_in = x_nlc.shape
    n_layers = 1 + len(hidden_weights)
    halo0 = ksize - 1
    halo_k = (n_layers - 1) * (ksize - 1)
    L_out = L_in - n_layers * (ksize - 1)
    if L_out < 1:
        raise ValueError("sequence too short for the conv stack")

    # Fold layer 0's taps into the input channels here (tiny C_in => cheap);
    # kernel layer 0 becomes one dot of depth K*C_in.
    L1 = L_in - halo0
    x_im = jnp.concatenate([x_nlc[:, k:k + L1, :] for k in range(ksize)],
                           axis=-1)                               # (B,L1,K*C_in)
    C0 = ksize * C_in

    if fold_hidden is None:
        fold_hidden = c_pad < _mxu_contraction_depth()
    fold_flags = (False,) + (bool(fold_hidden),) * (n_layers - 1)
    any_fold = any(fold_flags[1:])

    kernel_ws = [w0_folded]
    for w in hidden_weights:                                      # (K,c_pad,c_pad)
        kernel_ws.append(w.reshape(ksize * c_pad, c_pad) if fold_hidden else w)
    kernel_ws = [w.astype(compute_dtype) for w in kernel_ws]

    out_dtype = x_nlc.dtype
    isz = jnp.dtype(x_im.dtype).itemsize
    csz = jnp.dtype(compute_dtype).itemsize
    osz = jnp.dtype(out_dtype).itemsize
    w_bytes = sum(int(w.size) * jnp.dtype(w.dtype).itemsize for w in kernel_ws)
    b_bytes = int(bias_stack.size) * 4
    n_act = min(2, n_layers - 1)

    cap = _vmem_capacity_bytes()
    budget = int(cap * 0.85)

    tl_max = max(8, _round_up(tl_max, 8))
    tl = min(_round_up(L_out, 8), tl_max)

    def plan(tl):
        n_tiles = pl.cdiv(L_out, tl)
        win = tl + halo_k
        win8 = _round_up(win, 8)
        L_need = n_tiles * tl + halo_k
        est = (2 * L_need * C0 * isz              # input block (double-buffered)
               + 2 * tl * c_pad * osz             # output block (double-buffered)
               + 2 * (w_bytes + b_bytes)          # weights/bias (<= 2 buffers)
               + n_act * win8 * c_pad * csz       # activation ping-pong scratch
               + (win8 * ksize * c_pad * csz if any_fold else 0)  # im2col slab
               + 3 * win8 * c_pad * 4)            # per-layer f32 acc headroom
        return n_tiles, win, win8, L_need, est

    n_tiles, win, win8, L_need, est = plan(tl)
    # TODO(synk): for very long sequences also tile the input along L with a
    # manual halo'd DMA (memory_space=pl.ANY) instead of only shrinking tl.
    while est > budget and tl > 8:
        tl = max(8, _round_up(tl // 2, 8))
        n_tiles, win, win8, L_need, est = plan(tl)

    if L_need > L1:
        x_im = jnp.pad(x_im, ((0, 0), (0, L_need - L1), (0, 0)))

    rows = tuple(tl + (n_layers - 1 - l) * (ksize - 1) for l in range(n_layers))
    vmem_limit = int(min(max(est * 3 // 2, min(32 * 1024 * 1024, budget)),
                         budget))

    kernel = functools.partial(
        _fused_conv1d_stack_kernel, ksize=ksize, n_layers=n_layers,
        c_pad=c_pad, tl=tl, win=win, rows=rows, compute_dtype=compute_dtype,
        fold_flags=fold_flags)

    scratch_shapes = [pltpu.VMEM((win8, c_pad), compute_dtype)
                      for _ in range(n_act)]
    if any_fold:
        scratch_shapes.append(pltpu.VMEM((win8, ksize * c_pad), compute_dtype))

    def build(single_buffer_consts):
        def const_spec(shape):
            ndim = len(shape)
            idx = lambda b, t: (0,) * ndim
            if single_buffer_consts:
                return pl.BlockSpec(shape, idx, pipeline_mode=pl.Buffered(1))
            return pl.BlockSpec(shape, idx)

        in_specs = [pl.BlockSpec((None, L_need, C0), lambda b, t: (b, 0, 0))]
        in_specs += [const_spec(tuple(w.shape)) for w in kernel_ws]
        in_specs.append(const_spec(tuple(bias_stack.shape)))
        out_spec = pl.BlockSpec((None, tl, c_pad), lambda b, t: (b, t, 0))

        return pl.pallas_call(
            kernel,
            out_shape=jax.ShapeDtypeStruct((B, L_out, c_pad), out_dtype),
            grid_spec=pltpu.PrefetchScalarGridSpec(
                num_scalar_prefetch=0,
                grid=(B, n_tiles),
                in_specs=in_specs,
                out_specs=out_spec,
                scratch_shapes=scratch_shapes),
            compiler_params=pltpu.CompilerParams(
                dimension_semantics=("parallel", "parallel"),
                vmem_limit_bytes=vmem_limit),
            interpret=interpret,
        )

    args = (x_im, *kernel_ws, bias_stack)
    try:
        # Constant-index weights/bias: single-buffer them (halves their VMEM
        # footprint; matters under v7x's 64 MiB cap).
        return build(True)(*args)
    except Exception:
        return build(False)(*args)


class BaseConvPallas:
    """JAX/Pallas counterpart of BaseConv: n_layers stacked valid Conv1d."""

    SYM_MASK = 'MASK'
    SYM_EOS = 'EOS'

    def __init__(self, vocab_size, kernel_size, hidden_size, n_channels,
                 n_layers, input_dropout_p, dropout_p, max_len_blocks,
                 key=None, dtype=jnp.float32, compute_dtype=jnp.bfloat16):
        self.vocab_size = vocab_size
        self.kernel_size = kernel_size
        self.hidden_size = hidden_size
        self.n_channels = n_channels
        self.n_layers = n_layers
        self.input_dropout_p = input_dropout_p
        self.dropout_p = dropout_p
        self.max_len_blocks = max_len_blocks
        self.dtype = dtype
        # MXU operand dtype.  bf16 is MXU-native on all generations; f32
        # accumulation/bias keeps the error to operand rounding only.  Pass
        # compute_dtype=jnp.float32 for exactness.
        self.compute_dtype = compute_dtype
        self.c_pad = _round_up(hidden_size, 128)

        if key is None:
            key = jax.random.PRNGKey(0)

        # PyTorch Conv1d weight is (C_out, C_in, K); keep a reference copy in
        # (K, C_in, C_out) plus padded kernel copies.
        self.weights, self.biases = [], []
        c_in = n_channels
        for layer in range(n_layers):
            c_out = hidden_size
            key, wk, bk = jax.random.split(key, 3)
            bound = 1.0 / math.sqrt(c_in * kernel_size)
            w_oik = jax.random.uniform(wk, (c_out, c_in, kernel_size), dtype,
                                       -bound, bound)
            b = jax.random.uniform(bk, (c_out,), dtype, -bound, bound)
            self.weights.append(jnp.transpose(w_oik, (2, 1, 0)))   # (K,C_in,C_out)
            self.biases.append(b)
            c_in = c_out

        # Layer 0 kernel weight: (K*C_in, c_pad); row k*C_in+c <-> tap k, ch c
        # (matches the wrapper's input im2col column ordering).
        w0 = jnp.zeros((kernel_size, n_channels, self.c_pad), dtype)
        w0 = w0.at[:, :, :hidden_size].set(self.weights[0])
        self.w0_folded = w0.reshape(kernel_size * n_channels,
                                    self.c_pad).astype(self.compute_dtype)

        # Hidden layers: (K, c_pad, c_pad), zero-padded in/out channels
        # (padded lanes stay exactly zero through the stack).
        self.hidden_weights = []
        for layer in range(1, n_layers):
            w = jnp.zeros((kernel_size, self.c_pad, self.c_pad), dtype)
            w = w.at[:, :hidden_size, :hidden_size].set(self.weights[layer])
            self.hidden_weights.append(w.astype(self.compute_dtype))

        self.bias_stack = jnp.stack(
            [jnp.pad(b, (0, self.c_pad - hidden_size)) for b in self.biases]
        )[:, None, :].astype(jnp.float32)                 # (n_layers, 1, c_pad)

    def __call__(self, x_ncl, fold_hidden=None, tl_max=512):
        """x_ncl: (B, C, L) like PyTorch NCL.  Returns (B, hidden, L_out)."""
        # input_dropout / dropout: identity in eval mode.
        h = jnp.transpose(x_ncl, (0, 2, 1))               # NCL -> NLC
        out = fused_conv1d_stack(
            h, self.w0_folded, self.hidden_weights, self.bias_stack,
            ksize=self.kernel_size, c_pad=self.c_pad,
            compute_dtype=self.compute_dtype, fold_hidden=fold_hidden,
            tl_max=tl_max)
        out = out[:, :, :self.hidden_size]                # drop lane padding
        # TODO(synk): keep NLC end-to-end when the downstream consumer accepts
        # channels-last; kept here for NCL parity with the PyTorch module.
        return jnp.transpose(out, (0, 2, 1))


def _reference_conv_stack(x_ncl, weights, biases):
    """Pure-JAX reference using lax.conv_general_dilated (NCL conv)."""
    h = x_ncl
    for w_kio, b in zip(weights, biases):
        w_oik = jnp.transpose(w_kio, (2, 1, 0))           # (C_out, C_in, K)
        h = jax.lax.conv_general_dilated(
            h, w_oik, window_strides=(1,), padding='VALID',
            dimension_numbers=('NCH', 'OIH', 'NCH'))
        h = h + b[None, :, None]
    return h


if __name__ == "__main__":
    # Small shapes consistent with the module: batch=2, n_channels=4,
    # seq len=16, hidden_size=32, kernel_size=3, n_layers=2.
    B, C_IN, L = 2, 4, 16
    HIDDEN, KSIZE, NLAYERS = 32, 3, 2

    key = jax.random.PRNGKey(0)
    common = dict(vocab_size=100, kernel_size=KSIZE, hidden_size=HIDDEN,
                  n_channels=C_IN, n_layers=NLAYERS, input_dropout_p=0.0,
                  dropout_p=0.0, max_len_blocks=8, key=key)
    model_f32 = BaseConvPallas(compute_dtype=jnp.float32, **common)
    model_bf16 = BaseConvPallas(**common)                 # default bf16 operands

    x = jax.random.normal(jax.random.PRNGKey(1), (B, C_IN, L), jnp.float32)
    ref = _reference_conv_stack(x, model_f32.weights, model_f32.biases)

    # Exact (f32 MXU operand) path.
    out = jax.block_until_ready(model_f32(x))
    assert out.shape == ref.shape, (out.shape, ref.shape)
    assert jnp.allclose(out, ref, atol=1e-4, rtol=1e-4), float(
        jnp.max(jnp.abs(out - ref)))

    # Default bf16-operand path (f32 accumulation) -> looser tolerance.
    out_bf = jax.block_until_ready(model_bf16(x))
    assert jnp.allclose(out_bf, ref, atol=5e-2, rtol=5e-2), float(
        jnp.max(jnp.abs(out_bf - ref)))

    # Exercise both hidden-layer matmul policies (K-dot vs im2col fold) and the
    # multi-tile path (halo'd windows + masked partial final output block).
    for fold in (False, True):
        out_t = jax.block_until_ready(model_f32(x, fold_hidden=fold, tl_max=8))
        assert jnp.allclose(out_t, ref, atol=1e-4, rtol=1e-4), float(
            jnp.max(jnp.abs(out_t - ref)))

    print("KERNEL_OK")
</pallas_src>

<mosaic_0001>
module attributes {stable_mosaic.version = 11 : i64} {
  func.func @_fused_conv1d_stack_kernel(%arg0: i32, %arg1: i32, %arg2: memref<1x18x12xf32, #tpu.memory_space<vmem>>, %arg3: memref<12x128xf32, #tpu.memory_space<vmem>>, %arg4: memref<3x128x128xf32, #tpu.memory_space<vmem>>, %arg5: memref<2x1x128xf32, #tpu.memory_space<vmem>>, %arg6: memref<1x16x128xf32, #tpu.memory_space<vmem>>, %arg7: memref<24x128xf32, #tpu.memory_space<vmem>>) attributes {dimension_semantics = [#tpu.dimension_semantics<parallel>, #tpu.dimension_semantics<parallel>], iteration_bounds = array<i64: 2, 1>, scalar_prefetch = 0 : i64, scratch_operands = 1 : i64, tpu.core_type = #tpu.core_type<tc>, window_params = [{transform_indices = @transform_0, window_bounds = array<i64: 1, 18, 12>}, {pipeline_mode = #tpu.pipeline_mode<synchronous>, transform_indices = @transform_1, window_bounds = array<i64: 12, 128>}, {pipeline_mode = #tpu.pipeline_mode<synchronous>, transform_indices = @transform_2, window_bounds = array<i64: 3, 128, 128>}, {pipeline_mode = #tpu.pipeline_mode<synchronous>, transform_indices = @transform_3, window_bounds = array<i64: 2, 1, 128>}, {transform_indices = @transform_4, window_bounds = array<i64: 1, 16, 128>}]} {
    %c16_i32 = arith.constant 16 : i32
    %0 = arith.muli %arg1, %c16_i32 : i32
    %1 = tpu.assume_multiple %0, 8 : i32
    %c0 = arith.constant 0 : index
    %2 = arith.index_cast %1 : i32 to index
    %c0_0 = arith.constant 0 : index
    %3 = vector.load %arg2[%c0, %2, %c0_0] : memref<1x18x12xf32, #tpu.memory_space<vmem>>, vector<1x18x12xf32>
    %4 = vector.shape_cast %3 : vector<1x18x12xf32> to vector<18x12xf32>
    %c0_1 = arith.constant 0 : index
    %c0_2 = arith.constant 0 : index
    %5 = vector.load %arg3[%c0_1, %c0_2] : memref<12x128xf32, #tpu.memory_space<vmem>>, vector<12x128xf32>
    %cst = arith.constant dense<0.000000e+00> : vector<18x128xf32>
    %6 = tpu.matmul %4, %5, %cst {dimension_numbers = #tpu.dot_dimension_numbers<[1], [0], [0], [1], [0, 0, 1, 1], [], []>} : vector<18x12xf32>, vector<12x128xf32>, vector<18x128xf32> -> vector<18x128xf32>
    %c0_3 = arith.constant 0 : index
    %c0_4 = arith.constant 0 : index
    %c0_5 = arith.constant 0 : index
    %7 = vector.load %arg5[%c0_3, %c0_4, %c0_5] : memref<2x1x128xf32, #tpu.memory_space<vmem>>, vector<1x1x128xf32>
    %8 = vector.shape_cast %7 : vector<1x1x128xf32> to vector<1x128xf32>
    %9 = vector.broadcast %8 : vector<1x128xf32> to vector<18x128xf32>
    %10 = arith.addf %6, %9 : vector<18x128xf32>
    %c0_6 = arith.constant 0 : index
    %c0_7 = arith.constant 0 : index
    %11 = vector.load %arg7[%c0_6, %c0_7] : memref<24x128xf32, #tpu.memory_space<vmem>>, vector<18x128xf32>
    tpu.vector_store %arg7[%c0_6, %c0_7], %10 {strides = array<i32>} : memref<24x128xf32, #tpu.memory_space<vmem>>, vector<18x128xf32>,
    %c0_8 = arith.constant 0 : index
    %c0_9 = arith.constant 0 : index
    %12 = vector.load %arg7[%c0_8, %c0_9] : memref<24x128xf32, #tpu.memory_space<vmem>>, vector<16x128xf32>
    %c0_10 = arith.constant 0 : index
    %c0_11 = arith.constant 0 : index
    %c0_12 = arith.constant 0 : index
    %13 = vector.load %arg4[%c0_10, %c0_11, %c0_12] : memref<3x128x128xf32, #tpu.memory_space<vmem>>, vector<1x128x128xf32>
    %14 = vector.shape_cast %13 : vector<1x128x128xf32> to vector<128x128xf32>
    %cst_13 = arith.constant dense<0.000000e+00> : vector<16x128xf32>
    %15 = tpu.matmul %12, %14, %cst_13 {dimension_numbers = #tpu.dot_dimension_numbers<[1], [0], [0], [1], [0, 0, 1, 1], [], []>} : vector<16x128xf32>, vector<128x128xf32>, vector<16x128xf32> -> vector<16x128xf32>
    %c1 = arith.constant 1 : index
    %c0_14 = arith.constant 0 : index
    %16 = vector.load %arg7[%c1, %c0_14] : memref<24x128xf32, #tpu.memory_space<vmem>>, vector<16x128xf32>
    %c1_15 = arith.constant 1 : index
    %c0_16 = arith.constant 0 : index
    %c0_17 = arith.constant 0 : index
    %17 = vector.load %arg4[%c1_15, %c0_16, %c0_17] : memref<3x128x128xf32, #tpu.memory_space<vmem>>, vector<1x128x128xf32>
    %18 = vector.shape_cast %17 : vector<1x128x128xf32> to vector<128x128xf32>
    %cst_18 = arith.constant dense<0.000000e+00> : vector<16x128xf32>
    %19 = tpu.matmul %16, %18, %cst_18 {dimension_numbers = #tpu.dot_dimension_numbers<[1], [0], [0], [1], [0, 0, 1, 1], [], []>} : vector<16x128xf32>, vector<128x128xf32>, vector<16x128xf32> -> vector<16x128xf32>
    %20 = arith.addf %15, %19 : vector<16x128xf32>
    %c2 = arith.constant 2 : index
    %c0_19 = arith.constant 0 : index
    %21 = vector.load %arg7[%c2, %c0_19] : memref<24x128xf32, #tpu.memory_space<vmem>>, vector<16x128xf32>
    %c2_20 = arith.constant 2 : index
    %c0_21 = arith.constant 0 : index
    %c0_22 = arith.constant 0 : index
    %22 = vector.load %arg4[%c2_20, %c0_21, %c0_22] : memref<3x128x128xf32, #tpu.memory_space<vmem>>, vector<1x128x128xf32>
    %23 = vector.shape_cast %22 : vector<1x128x128xf32> to vector<128x128xf32>
    %cst_23 = arith.constant dense<0.000000e+00> : vector<16x128xf32>
    %24 = tpu.matmul %21, %23, %cst_23 {dimension_numbers = #tpu.dot_dimension_numbers<[1], [0], [0], [1], [0, 0, 1, 1], [], []>} : vector<16x128xf32>, vector<128x128xf32>, vector<16x128xf32> -> vector<16x128xf32>
    %25 = arith.addf %20, %24 : vector<16x128xf32>
    %c1_24 = arith.constant 1 : index
    %c0_25 = arith.constant 0 : index
    %c0_26 = arith.constant 0 : index
    %26 = vector.load %arg5[%c1_24, %c0_25, %c0_26] : memref<2x1x128xf32, #tpu.memory_space<vmem>>, vector<1x1x128xf32>
    %27 = vector.shape_cast %26 : vector<1x1x128xf32> to vector<1x128xf32>
    %28 = vector.broadcast %27 : vector<1x128xf32> to vector<16x128xf32>
    %29 = arith.addf %25, %28 : vector<16x128xf32>
    %c0_27 = arith.constant 0 : index
    %c0_28 = arith.constant 0 : index
    %c0_29 = arith.constant 0 : index
    %30 = vector.load %arg6[%c0_27, %c0_28, %c0_29] : memref<1x16x128xf32, #tpu.memory_space<vmem>>, vector<1x16x128xf32>
    %31 = vector.shape_cast %30 : vector<1x16x128xf32> to vector<16x128xf32>
    %32 = vector.shape_cast %29 : vector<16x128xf32> to vector<1x16x128xf32>
    tpu.vector_store %arg6[%c0_27, %c0_28, %c0_29], %32 {strides = array<i32>} : memref<1x16x128xf32, #tpu.memory_space<vmem>>, vector<1x16x128xf32>,
    return
  }
  func.func @transform_0(%arg0: i32, %arg1: i32) -> (i32, i32, i32) {
    %c0_i32 = arith.constant 0 : i32
    %c0_i32_0 = arith.constant 0 : i32
    %c0_i32_1 = arith.constant 0 : i32
    return %arg0, %c0_i32, %c0_i32_0 : i32, i32, i32
  }
  func.func @transform_1(%arg0: i32, %arg1: i32) -> (i32, i32) {
    %c0_i32 = arith.constant 0 : i32
    %c0_i32_0 = arith.constant 0 : i32
    %c0_i32_1 = arith.constant 0 : i32
    return %c0_i32, %c0_i32_0 : i32, i32
  }
  func.func @transform_2(%arg0: i32, %arg1: i32) -> (i32, i32, i32) {
    %c0_i32 = arith.constant 0 : i32
    %c0_i32_0 = arith.constant 0 : i32
    %c0_i32_1 = arith.constant 0 : i32
    %c0_i32_2 = arith.constant 0 : i32
    return %c0_i32, %c0_i32_0, %c0_i32_1 : i32, i32, i32
  }
  func.func @transform_3(%arg0: i32, %arg1: i32) -> (i32, i32, i32) {
    %c0_i32 = arith.constant 0 : i32
    %c0_i32_0 = arith.constant 0 : i32
    %c0_i32_1 = arith.constant 0 : i32
    %c0_i32_2 = arith.constant 0 : i32
    return %c0_i32, %c0_i32_0, %c0_i32_1 : i32, i32, i32
  }
  func.func @transform_4(%arg0: i32, %arg1: i32) -> (i32, i32, i32) {
    %c0_i32 = arith.constant 0 : i32
    %c0_i32_0 = arith.constant 0 : i32
    return %arg0, %arg1, %c0_i32 : i32, i32, i32
  }
}

module attributes {stable_mosaic.version = 11 : i64} {
  func.func @_fused_conv1d_stack_kernel(%arg0: i32, %arg1: i32, %arg2: memref<1x18x12xf32, #tpu.memory_space<vmem>>, %arg3: memref<12x128xf32, #tpu.memory_space<vmem>>, %arg4: memref<3x128x128xf32, #tpu.memory_space<vmem>>, %arg5: memref<2x1x128xf32, #tpu.memory_space<vmem>>, %arg6: memref<1x16x128xf32, #tpu.memory_space<vmem>>, %arg7: memref<24x128xf32, #tpu.memory_space<vmem>>) attributes {dimension_semantics = [#tpu.dimension_semantics<parallel>, #tpu.dimension_semantics<parallel>], iteration_bounds = array<i64: 2, 1>, scalar_prefetch = 0 : i64, scratch_operands = 1 : i64, tpu.core_type = #tpu.core_type<tc>, window_params = [{transform_indices = @transform_0, window_bounds = array<i64: 1, 18, 12>}, {pipeline_mode = #tpu.pipeline_mode<synchronous>, transform_indices = @transform_1, window_bounds = array<i64: 12, 128>}, {pipeline_mode = #tpu.pipeline_mode<synchronous>, transform_indices = @transform_2, window_bounds = array<i64: 3, 128, 128>}, {pipeline_mode = #tpu.pipeline_mode<synchronous>, transform_indices = @transform_3, window_bounds = array<i64: 2, 1, 128>}, {transform_indices = @transform_4, window_bounds = array<i64: 1, 16, 128>}]} {
    %c16_i32 = arith.constant 16 : i32
    %0 = arith.muli %arg1, %c16_i32 : i32
    %1 = tpu.assume_multiple %0, 8 : i32
    %c0 = arith.constant 0 : index
    %2 = arith.index_cast %1 : i32 to index
    %c0_0 = arith.constant 0 : index
    %3 = vector.load %arg2[%c0, %2, %c0_0] : memref<1x18x12xf32, #tpu.memory_space<vmem>>, vector<1x18x12xf32>
    %4 = vector.shape_cast %3 : vector<1x18x12xf32> to vector<18x12xf32>
    %c0_1 = arith.constant 0 : index
    %c0_2 = arith.constant 0 : index
    %5 = vector.load %arg3[%c0_1, %c0_2] : memref<12x128xf32, #tpu.memory_space<vmem>>, vector<12x128xf32>
    %cst = arith.constant dense<0.000000e+00> : vector<18x128xf32>
    %6 = tpu.matmul %4, %5, %cst {dimension_numbers = #tpu.dot_dimension_numbers<[1], [0], [0], [1], [0, 0, 1, 1], [], []>} : vector<18x12xf32>, vector<12x128xf32>, vector<18x128xf32> -> vector<18x128xf32>
    %c0_3 = arith.constant 0 : index
    %c0_4 = arith.constant 0 : index
    %c0_5 = arith.constant 0 : index
    %7 = vector.load %arg5[%c0_3, %c0_4, %c0_5] : memref<2x1x128xf32, #tpu.memory_space<vmem>>, vector<1x1x128xf32>
    %8 = vector.shape_cast %7 : vector<1x1x128xf32> to vector<1x128xf32>
    %9 = vector.broadcast %8 : vector<1x128xf32> to vector<18x128xf32>
    %10 = arith.addf %6, %9 : vector<18x128xf32>
    %c0_6 = arith.constant 0 : index
    %c0_7 = arith.constant 0 : index
    %11 = vector.load %arg7[%c0_6, %c0_7] : memref<24x128xf32, #tpu.memory_space<vmem>>, vector<18x128xf32>
    tpu.vector_store %arg7[%c0_6, %c0_7], %10 {strides = array<i32>} : memref<24x128xf32, #tpu.memory_space<vmem>>, vector<18x128xf32>,
    %c0_8 = arith.constant 0 : index
    %c0_9 = arith.constant 0 : index
    %12 = vector.load %arg7[%c0_8, %c0_9] : memref<24x128xf32, #tpu.memory_space<vmem>>, vector<16x128xf32>
    %c0_10 = arith.constant 0 : index
    %c0_11 = arith.constant 0 : index
    %c0_12 = arith.constant 0 : index
    %13 = vector.load %arg4[%c0_10, %c0_11, %c0_12] : memref<3x128x128xf32, #tpu.memory_space<vmem>>, vector<1x128x128xf32>
    %14 = vector.shape_cast %13 : vector<1x128x128xf32> to vector<128x128xf32>
    %cst_13 = arith.constant dense<0.000000e+00> : vector<16x128xf32>
    %15 = tpu.matmul %12, %14, %cst_13 {dimension_numbers = #tpu.dot_dimension_numbers<[1], [0], [0], [1], [0, 0, 1, 1], [], []>} : vector<16x128xf32>, vector<128x128xf32>, vector<16x128xf32> -> vector<16x128xf32>
    %c1 = arith.constant 1 : index
    %c0_14 = arith.constant 0 : index
    %16 = vector.load %arg7[%c1, %c0_14] : memref<24x128xf32, #tpu.memory_space<vmem>>, vector<16x128xf32>
    %c1_15 = arith.constant 1 : index
    %c0_16 = arith.constant 0 : index
    %c0_17 = arith.constant 0 : index
    %17 = vector.load %arg4[%c1_15, %c0_16, %c0_17] : memref<3x128x128xf32, #tpu.memory_space<vmem>>, vector<1x128x128xf32>
    %18 = vector.shape_cast %17 : vector<1x128x128xf32> to vector<128x128xf32>
    %cst_18 = arith.constant dense<0.000000e+00> : vector<16x128xf32>
    %19 = tpu.matmul %16, %18, %cst_18 {dimension_numbers = #tpu.dot_dimension_numbers<[1], [0], [0], [1], [0, 0, 1, 1], [], []>} : vector<16x128xf32>, vector<128x128xf32>, vector<16x128xf32> -> vector<16x128xf32>
    %20 = arith.addf %15, %19 : vector<16x128xf32>
    %c2 = arith.constant 2 : index
    %c0_19 = arith.constant 0 : index
    %21 = vector.load %arg7[%c2, %c0_19] : memref<24x128xf32, #tpu.memory_space<vmem>>, vector<16x128xf32>
    %c2_20 = arith.constant 2 : index
    %c0_21 = arith.constant 0 : index
    %c0_22 = arith.constant 0 : index
    %22 = vector.load %arg4[%c2_20, %c0_21, %c0_22] : memref<3x128x128xf32, #tpu.memory_space<vmem>>, vector<1x128x128xf32>
    %23 = vector.shape_cast %22 : vector<1x128x128xf32> to vector<128x128xf32>
    %cst_23 = arith.constant dense<0.000000e+00> : vector<16x128xf32>
    %24 = tpu.matmul %21, %23, %cst_23 {dimension_numbers = #tpu.dot_dimension_numbers<[1], [0], [0], [1], [0, 0, 1, 1], [], []>} : vector<16x128xf32>, vector<128x128xf32>, vector<16x128xf32> -> vector<16x128xf32>
    %25 = arith.addf %20, %24 : vector<16x128xf32>
    %c1_24 = arith.constant 1 : index
    %c0_25 = arith.constant 0 : index
    %c0_26 = arith.constant 0 : index
    %26 = vector.load %arg5[%c1_24, %c0_25, %c0_26] : memref<2x1x128xf32, #tpu.memory_space<vmem>>, vector<1x1x128xf32>
    %27 = vector.shape_cast %26 : vector<1x1x128xf32> to vector<1x128xf32>
    %28 = vector.broadcast %27 : vector<1x128xf32> to vector<16x128xf32>
    %29 = arith.addf %25, %28 : vector<16x128xf32>
    %c0_27 = arith.constant 0 : index
    %c0_28 = arith.constant 0 : index
    %c0_29 = arith.constant 0 : index
    %30 = vector.load %arg6[%c0_27, %c0_28, %c0_29] : memref<1x16x128xf32, #tpu.memory_space<vmem>>, vector<1x16x128xf32>
    %31 = vector.shape_cast %30 : vector<1x16x128xf32> to vector<16x128xf32>
    %32 = vector.shape_cast %29 : vector<16x128xf32> to vector<1x16x128xf32>
    tpu.vector_store %arg6[%c0_27, %c0_28, %c0_29], %32 {strides = array<i32>} : memref<1x16x128xf32, #tpu.memory_space<vmem>>, vector<1x16x128xf32>,
    return
  }
  func.func @transform_0(%arg0: i32, %arg1: i32) -> (i32, i32, i32) {
    %c0_i32 = arith.constant 0 : i32
    %c0_i32_0 = arith.constant 0 : i32
    %c0_i32_1 = arith.constant 0 : i32
    return %arg0, %c0_i32, %c0_i32_0 : i32, i32, i32
  }
  func.func @transform_1(%arg0: i32, %arg1: i32) -> (i32, i32) {
    %c0_i32 = arith.constant 0 : i32
    %c0_i32_0 = arith.constant 0 : i32
    %c0_i32_1 = arith.constant 0 : i32
    return %c0_i32, %c0_i32_0 : i32, i32
  }
  func.func @transform_2(%arg0: i32, %arg1: i32) -> (i32, i32, i32) {
    %c0_i32 = arith.constant 0 : i32
    %c0_i32_0 = arith.constant 0 : i32
    %c0_i32_1 = arith.constant 0 : i32
    %c0_i32_2 = arith.constant 0 : i32
    return %c0_i32, %c0_i32_0, %c0_i32_1 : i32, i32, i32
  }
  func.func @transform_3(%arg0: i32, %arg1: i32) -> (i32, i32, i32) {
    %c0_i32 = arith.constant 0 : i32
    %c0_i32_0 = arith.constant 0 : i32
    %c0_i32_1 = arith.constant 0 : i32
    %c0_i32_2 = arith.constant 0 : i32
    return %c0_i32, %c0_i32_0, %c0_i32_1 : i32, i32, i32
  }
  func.func @transform_4(%arg0: i32, %arg1: i32) -> (i32, i32, i32) {
    %c0_i32 = arith.constant 0 : i32
    %c0_i32_0 = arith.constant 0 : i32
    return %arg0, %arg1, %c0_i32 : i32, i32, i32
  }
}

</mosaic_0001>

<bundles_post_ra>
// kernel: tpu_custom_call.1
= control target key start
LH: loop header
LB: loop body
LE: loop exit
PB: predicated region body
PF: predicated region fallthrough
CT: control target
= control target key end

     0   :  { %9 = vsyncpa [#allocation4], 0  ;;  %s1168_s15 = smov 0   ;;  %s1170_s16 = smov 0   ;;  %s1271_s0 = inlined_call_operand.vmem [shape: f32[2,18,12], index: 0, kind: input, shape index: {}]   ;;  %s1272_s1 = inlined_call_operand.vmem [shape: f32[12,128], index: 1, kind: input, shape index: {}]   ;;  %s1273_s2 = inlined_call_operand.hbm [shape: f32[3,128,128], index: 2, kind: input, shape index: {}]   ;;  %s1274_s3 = inlined_call_operand.vmem [shape: f32[2,1,128], index: 3, kind: input, shape index: {}]   ;;  %s1275_s4 = inlined_call_operand.vmem [shape: f32[2,12,128], index: 4, kind: output, shape index: {}]  }
   0x1   :  { %s1172_s17 = smov 0  }
   0x2 LB: > { %s737_s18 = sadd.s32 4294967295, %s1134_s17   ;;  %s27_s19 = sadd.s32 1, %s1130_s16  ;;  %s1134_s17 = sphi %s1172_s17, %s15_s17   ;;  %s1130_s16 = sphi %s1170_s16, %s1285_s16   ;;  %s1126_s15 = sphi %s1168_s15, %s1284_s15  }
   0x3   : > { %p29_p0 = scmp.ge.s32.totalorder %s27_s19, 2  ;;  %p739_p1 = scmp.ge.s32.totalorder %s1134_s17, 1 }
   0x4   : > { %p149_p2 = scmp.lt.s32.totalorder %s1134_s17, 3  ;;  %p1193_p4 = scmp.eq.s32.totalorder %s737_s18, 0 }
   0x5   : > { %s1287_s19 = smov (%p29_p0, %s27_s19), 0  ;;  %s1136_s22 = smov [#allocation3]  }
   0x6   : > { %p1189_p3 = pnand %p739_p1, %p149_p2  ;;  %s164_s23 = sshll.u32 %s1136_s22, 4  ;;  %s165_s23 = int_to_ptr.vmem [resolvable:$true] %s164_s23 }
   0x7   : > { %s1280_s21 = scalar_select %p1193_p4, 1, 0 }
   0x8   : > { %s1279_s20 = scalar_select %p1189_p3, 1, 0 }
   0x9   : > { %p1043_p5 = pneg %p1189_p3  ;;  %s1080_s27 = scalar_lea.hbm %s1273_s2, 6144 }
   0xa   : > { %p1081_p7 = scmp.ne.s32.totalorder %s1273_s2, %s1080_s27  ;;  %p1087_p11 = scmp.lt.u32.totalorder %s1080_s27, %s1273_s2 }
   0xb   : > { %p1201_p6 = pnand %p1193_p4, %p1043_p5 }
   0xd   : > { %p1082_p8 = pneg %p1201_p6 }
   0xf   : > { %p1083_p9 = pnand %p1082_p8, %p1081_p7 }
  0x11   : > { %p1084_p10 = pneg %p1083_p9 }
  0x13   : > { %p1089_p12 = pnand %p1087_p11, %p1084_p10 }
  0x15   : > { %1092 = shalt.err (!%p1089_p12)
}
  0x16   : > { %s1093_s6 = scalar_lea.vmem %s165_s23, 6144  ;;  %p1101_p2 = scmp.lt.s32.totalorder %s165_s23, %s165_s23 }
  0x17   : > { %p1094_p13 = scmp.ne.s32.totalorder %s165_s23, %s1093_s6  ;;  %p1102_p5 = scmp.lt.s32.totalorder %s1093_s6, %s1093_s6 }
  0x19   : > { %p1096_p0 = pnand %p1094_p13, %p1082_p8  ;;  %p1103_p4 = por %p1102_p5, %p1101_p2 }
  0x1b   : > { %p1097_p1 = pneg %p1096_p0 }
  0x1d   : > { %p1104_p3 = pnand %p1103_p4, %p1097_p1 }
  0x1f   : > { %1107 = shalt.err (!%p1104_p3)
}
  0x20   : > { %s1137_s7 = smov 128   ;;  %s1138_s8 = smov 8  }
  0x21   : > { %1046 = dma.hbm_to_vmem [thread:$0]  (!%p1201_p6), %s1273_s2, 6144, %s165_s23, [#allocation4], %s1137_s7, %s1137_s7, %s1138_s8  }
  0x22   : > { %p1282_p7 = scmp.ne.s32.totalorder %s1279_s20, 0 }
  0x23   : > { %p1283_p9 = scmp.ne.s32.totalorder (!%p1282_p7), %s1280_s21, 0 }
  0x24   : > { %191 = sbr.rel (%p1282_p7) target bundleno = 519 (0x207), region = 36 }
  0x2b   : > { %1121 = dma.done.wait (%p1283_p9), [#allocation4], 6144  }
  0x2c   : > { %1123 = vsyncadd (%p1283_p9), [#allocation4], 4294961152  ;;  %v1139_v0 = vmov 0.0|0.0   ;;  %p221_p3 = scmp.lt.s32.totalorder %s1126_s15, 1  ;;  %vm1140_vm0 = vmmov 0   ;;  %v1141_v1 = vmov 0.0  }
  0x2d   : > { %934 = vmatprep.subr.bf16.mxu0 %v1139_v0  ;;  %820 = vmatprep.mubr.msk.f32.mxu0 %vm1140_vm0, %v1141_v1  ;;  %vm260_vm1 = vcmask 1043456   ;;  %vm1142_vm2 = vmmov 1   ;;  %v241_v2 = vld [vmem:[%s1272_s1] sm:$0xff]  ;;  %v242_v3 = vld [vmem:[%s1272_s1 + $0x8] sm:$0xf]  ;;  %v349_v4 = vld [vmem:[#allocation3] sm:$0xff] }
  0x2e   : > { %s1289_s15 = smov (!%p221_p3, %s1126_s15), 1  ;;  %vm936_vm3 = vmpackc.low %vm260_vm1, %vm1142_vm2  ;;  %v935_v5 = vpack.c.bf16 %v242_v3, %v241_v2  ;;  %v350_v6 = vld [vmem:[#allocation3 + $0x8] sm:$0xff]  ;;  %v351_v7 = vld [vmem:[#allocation3 + $0x10] sm:$0xff]  ;;  %vm250_vm4 = vcmask 97280  }
  0x2f   : > { %s1038_s11 = smul.u32 24, %s1289_s15  ;;  %v352_v8 = vld [vmem:[#allocation3 + $0x18] sm:$0xff]  ;;  %v970_v10 = vpack.c.bf16 %v350_v6, %v349_v4  ;;  %v368_v12 = vld [vmem:[#allocation3 + $0x80] sm:$0xff]  ;;  %v369_v13 = vld [vmem:[#allocation3 + $0x88] sm:$0xff]  ;;  %s756_s25 = sshll.u32 %s1289_s15, 4 }
  0x30   : > { %937 = vmatpush3.bf16.msk.msra.mxu0 %vm936_vm3, %v935_v5  ;;  %v974_v11 = vpack.c.bf16 %v352_v8, %v351_v7  ;;  %v938_v14 = vpack.c.bf16 %v369_v13, %v368_v12  ;;  %v353_v15 = vld [vmem:[#allocation3 + $0x20] sm:$0xff]  ;;  %v354_v16 = vld [vmem:[#allocation3 + $0x28] sm:$0xff]  ;;  %v370_v17 = vld [vmem:[#allocation3 + $0x90] sm:$0xff]  ;;  %s234_s30 = scalar_lea.vmem %s1275_s4, %s756_s25 }
  0x31   : > { %s1242_s22 = scalar_lea.vmem %s1271_s0, %s1038_s11  ;;  %971 = vmatprep.subr.bf16.mxu1 %v970_v10  ;;  %v371_v18 = vld [vmem:[#allocation3 + $0x98] sm:$0xff]  ;;  %v978_v20 = vpack.c.bf16 %v354_v16, %v353_v15  ;;  %v355_v21 = vld [vmem:[#allocation3 + $0x30] sm:$0xff]  ;;  %v372_v24 = vld [vmem:[#allocation3 + $0xa0] sm:$0xff] }
  0x32   : > { %v238_v9 = vld [vmem:[%s1242_s22] sm:$0xff]  ;;  %973 = vmatpush3.bf16.msra.mxu1 %v970_v10  ;;  %v239_v19 = vld [vmem:[%s1242_s22 + $0x8] sm:$0xff]  ;;  %939 = vmatprep.subr.bf16.mxu0 %v938_v14  ;;  %v942_v22 = vpack.c.bf16 %v371_v18, %v370_v17  ;;  %v356_v23 = vld [vmem:[#allocation3 + $0x38] sm:$0xff] }
  0x33   : > { %821 = vmatmul.mubr.msk.f32.vlgmr.msra.gmra.mrb[0].mxu0 %vm250_vm4, %v238_v9  ;;  %975 = vmatprep.subr.bf16.mxu1 %v974_v11  ;;  %v373_v25 = vld [vmem:[#allocation3 + $0xa8] sm:$0xff]  ;;  %v240_v26 = vld [vmem:[%s1242_s22 + $0x10] sm:$0x3]  ;;  %v982_v27 = vpack.c.bf16 %v356_v23, %v355_v21  ;;  %v374_v29 = vld [vmem:[#allocation3 + $0xb0] sm:$0xff] }
  0x34   : > { %823 = vmatprep.mubr.msk.f32.mxu0 %vm1140_vm0, %v1141_v1  ;;  %941 = vmatpush3.bf16.msra.mxu0 %v938_v14  ;;  %v946_v28 = vpack.c.bf16 %v373_v25, %v372_v24  ;;  %v375_v30 = vld [vmem:[#allocation3 + $0xb8] sm:$0xff]  ;;  %v357_v31 = vld [vmem:[#allocation3 + $0x40] sm:$0xff]  ;;  %v358_v32 = vld [vmem:[#allocation3 + $0x48] sm:$0xff] }
  0x35   : > { %943 = vmatprep.subr.bf16.mxu0 %v942_v22  ;;  %v950_v33 = vpack.c.bf16 %v375_v30, %v374_v29  ;;  %v986_v34 = vpack.c.bf16 %v358_v32, %v357_v31  ;;  %v359_v35 = vld [vmem:[#allocation3 + $0x50] sm:$0xff]  ;;  %v360_v36 = vld [vmem:[#allocation3 + $0x58] sm:$0xff]  ;;  %v361_v38 = vld [vmem:[#allocation3 + $0x60] sm:$0xff] }
  0x36   : > { %977 = vmatpush3.bf16.msra.mxu1 %v974_v11  ;;  %v990_v37 = vpack.c.bf16 %v360_v36, %v359_v35  ;;  %v362_v39 = vld [vmem:[#allocation3 + $0x68] sm:$0xff]  ;;  %v363_v41 = vld [vmem:[#allocation3 + $0x70] sm:$0xff]  ;;  %v364_v42 = vld [vmem:[#allocation3 + $0x78] sm:$0xff] }
  0x37   : > { %824 = vmatmul.mubr.msk.f32.gmra.mrb[2].mxu0 %vm250_vm4, %v239_v19  ;;  %979 = vmatprep.subr.bf16.mxu1 %v978_v20  ;;  %v994_v40 = vpack.c.bf16 %v362_v39, %v361_v38  ;;  %v376_v43 = vld [vmem:[#allocation3 + $0xc0] sm:$0xff]  ;;  %v377_v44 = vld [vmem:[#allocation3 + $0xc8] sm:$0xff]  ;;  %v998_v45 = vpack.c.bf16 %v364_v42, %v363_v41  ;;  %v378_v49 = vld [vmem:[#allocation3 + $0xd0] sm:$0xff] }
  0x38   : > { %826 = vmatprep.mubr.msk.f32.mxu0 %vm1140_vm0, %v1141_v1  ;;  %945 = vmatpush3.bf16.msra.mxu0 %v942_v22  ;;  %v954_v46 = vpack.c.bf16 %v377_v44, %v376_v43  ;;  %v537_v47 = vld [vmem:[#allocation3 + $0x100] sm:$0xff]  ;;  %v538_v48 = vld [vmem:[#allocation3 + $0x108] sm:$0xff]  ;;  %v379_v50 = vld [vmem:[#allocation3 + $0xd8] sm:$0xff] }
  0x39   : > { %947 = vmatprep.subr.bf16.mxu0 %v946_v28  ;;  %v1002_v51 = vpack.c.bf16 %v538_v48, %v537_v47  ;;  %v958_v52 = vpack.c.bf16 %v379_v50, %v378_v49  ;;  %v380_v53 = vld [vmem:[#allocation3 + $0xe0] sm:$0xff]  ;;  %v381_v54 = vld [vmem:[#allocation3 + $0xe8] sm:$0xff]  ;;  %v382_v56 = vld [vmem:[#allocation3 + $0xf0] sm:$0xff] }
  0x3a   : > { %981 = vmatpush3.bf16.msra.mxu1 %v978_v20  ;;  %v962_v55 = vpack.c.bf16 %v381_v54, %v380_v53  ;;  %v383_v57 = vld [vmem:[#allocation3 + $0xf8] sm:$0xff]  ;;  %v747_v59 = vld [vmem:[%s1274_s3] ss:$0 sm:$0xff]  ;;  %v539_v63 = vld [vmem:[#allocation3 + $0x110] sm:$0xff] }
  0x3b   : > { %827 = vmatmul.mubr.msk.f32.gmra.mrb[4].mxu0 %vm250_vm4, %v240_v26  ;;  %983 = vmatprep.subr.bf16.mxu1 %v982_v27  ;;  %v966_v58 = vpack.c.bf16 %v383_v57, %v382_v56  ;;  %v540_v0 = vld [vmem:[#allocation3 + $0x118] sm:$0xff]  ;;  %v541_v5 = vld [vmem:[#allocation3 + $0x120] sm:$0xff]  ;;  %v542_v6 = vld [vmem:[#allocation3 + $0x128] sm:$0xff] }
  0x3c   : > { %949 = vmatpush3.bf16.msra.mxu0 %v946_v28  ;;  %v1006_v4 = vpack.c.bf16 %v540_v0, %v539_v63  ;;  %v1010_v9 = vpack.c.bf16 %v542_v6, %v541_v5  ;;  %v543_v11 = vld [vmem:[#allocation3 + $0x130] sm:$0xff]  ;;  %v544_v12 = vld [vmem:[#allocation3 + $0x138] sm:$0xff]  ;;  %v545_v14 = vld [vmem:[#allocation3 + $0x140] sm:$0xff] }
  0x3d   : > { %951 = vmatprep.subr.bf16.mxu0 %v950_v33  ;;  %v1014_v13 = vpack.c.bf16 %v544_v12, %v543_v11  ;;  %v546_v17 = vld [vmem:[#allocation3 + $0x148] sm:$0xff]  ;;  %v547_v20 = vld [vmem:[#allocation3 + $0x150] sm:$0xff]  ;;  %v548_v21 = vld [vmem:[#allocation3 + $0x158] sm:$0xff] }
  0x3e   : > { %985 = vmatpush3.bf16.msra.mxu1 %v982_v27  ;;  %v1018_v18 = vpack.c.bf16 %v546_v17, %v545_v14  ;;  %v1022_v22 = vpack.c.bf16 %v548_v21, %v547_v20  ;;  %v549_v23 = vld [vmem:[#allocation3 + $0x160] sm:$0xff]  ;;  %v550_v24 = vld [vmem:[#allocation3 + $0x168] sm:$0xff]  ;;  %v551_v26 = vld [vmem:[#allocation3 + $0x170] sm:$0xff] }
  0x3f   : > { %987 = vmatprep.subr.bf16.mxu1 %v986_v34  ;;  %v1026_v25 = vpack.c.bf16 %v550_v24, %v549_v23  ;;  %v552_v27 = vld [vmem:[#allocation3 + $0x178] sm:$0xff] }
  0x40   : > { %953 = vmatpush3.bf16.msra.mxu0 %v950_v33  ;;  %v1030_v28 = vpack.c.bf16 %v552_v27, %v551_v26  ;;  %v753_v33 = vld [vmem:[%s1274_s3 + $0x1] ss:$0 sm:$0xff] }
  0x41   : > { %955 = vmatprep.subr.bf16.mxu0 %v954_v46 }
  0x42   : > { %989 = vmatpush3.bf16.msra.mxu1 %v986_v34 }
  0x43   : > { %991 = vmatprep.subr.bf16.mxu1 %v990_v37 }
  0x44   : > { %957 = vmatpush3.bf16.msra.mxu0 %v954_v46 }
  0x45   : > { %959 = vmatprep.subr.bf16.mxu0 %v958_v52 }
  0x46   : > { %993 = vmatpush3.bf16.msra.mxu1 %v990_v37 }
  0x47   : > { %995 = vmatprep.subr.bf16.mxu1 %v994_v40 }
  0x48   : > { %961 = vmatpush3.bf16.msra.mxu0 %v958_v52 }
  0x49   : > { %963 = vmatprep.subr.bf16.mxu0 %v962_v55 }
  0x4a   : > { %997 = vmatpush3.bf16.msra.mxu1 %v994_v40 }
  0x4b   : > { %999 = vmatprep.subr.bf16.mxu1 %v998_v45 }
  0x4c   : > { %965 = vmatpush3.bf16.msra.mxu0 %v962_v55 }
  0x4d   : > { %967 = vmatprep.subr.bf16.mxu0 %v966_v58 }
  0x4e   : > { %1001 = vmatpush3.bf16.msra.mxu1 %v998_v45 }
  0x4f   : > { %1003 = vmatprep.subr.bf16.mxu1 %v1002_v51 }
  0x50   : > { %969 = vmatpush3.bf16.msra.mxu0 %v966_v58 }
 0x106   : > { %v330_v60 = vpop.f32.mrb[0].mxu0 }
 0x107   : > { %v331_v61 = vadd.f32 %v747_v59, %v330_v60  ;;  %v822_v62 = vpop.f32.mrb[1].mxu0 }
 0x109   : > { %344 = vst [vmem:[#allocation2] sm:$0xff] %v331_v61  ;;  %896 = vmatprep.mubr.f32.mxu1 %v331_v61 }
 0x10a   : > { %v335_v1 = vpop.f32.mrb[2].mxu0 }
 0x10b   : > { %v336_v2 = vadd.f32 %v747_v59, %v335_v1  ;;  %v825_v3 = vpop.f32.mrb[3].mxu0 }
 0x10d   : > { %345 = vst [vmem:[#allocation2 + $0x8] sm:$0xff] %v336_v2  ;;  %897 = vmatmul.mubr.f32.vlgmr.msra.gmra.mrb[0].mxu1 %v336_v2 }
 0x10e   : > { %v340_v7 = vpop.f32.mrb[4].mxu0  ;;  %1005 = vmatpush3.bf16.msra.mxu1 %v1002_v51 }
 0x10f   : > { %v341_v8 = vadd.f32 %v747_v59, %v340_v7  ;;  %1007 = vmatprep.subr.bf16.mxu1 %v1006_v4  ;;  %v828_v10 = vpop.f32.mrb[5].mxu0 }
 0x111   : > { %346 = vst [vmem:[#allocation2 + $0x10] sm:$0x3] %v341_v8 }
 0x112   : > { %1009 = vmatpush3.bf16.msra.mxu1 %v1006_v4 }
 0x113   : > { %1011 = vmatprep.subr.bf16.mxu1 %v1010_v9 }
 0x114   : > { %v365_v15 = vld [vmem:[#allocation2 + $0x1] sm:$0xff] }
 0x115   : > { %v534_v16 = vld [vmem:[#allocation2 + $0x2] sm:$0xff]  ;;  %861 = vmatprep.mubr.f32.mxu0 %v365_v15 }
 0x116   : > { %931 = vmatprep.mubr.f32.mxu1 %v534_v16  ;;  %1013 = vmatpush3.bf16.msra.mxu1 %v1010_v9 }
 0x117   : > { %1015 = vmatprep.subr.bf16.mxu1 %v1014_v13 }
 0x118   : > { %v366_v19 = vld [vmem:[#allocation2 + $0x9] sm:$0xff] }
 0x119   : > { %862 = vmatmul.mubr.f32.vlgmr.msra.gmra.mrb[6].mxu0 %v366_v19  ;;  %v535_v29 = vld [vmem:[#allocation2 + $0xa] sm:$0xff] }
 0x11a   : > { %1017 = vmatpush3.bf16.msra.mxu1 %v1014_v13 }
 0x11b   : > { %1019 = vmatprep.subr.bf16.mxu1 %v1018_v18 }
 0x11e   : > { %1021 = vmatpush3.bf16.msra.mxu1 %v1018_v18 }
 0x11f   : > { %1023 = vmatprep.subr.bf16.mxu1 %v1022_v22 }
 0x122   : > { %1025 = vmatpush3.bf16.msra.mxu1 %v1022_v22 }
 0x123   : > { %1027 = vmatprep.subr.bf16.mxu1 %v1026_v25 }
 0x126   : > { %1029 = vmatpush3.bf16.msra.mxu1 %v1026_v25 }
 0x127   : > { %1031 = vmatprep.subr.bf16.mxu1 %v1030_v28 }
 0x12a   : > { %1033 = vmatpush3.bf16.msra.mxu1 %v1030_v28 }
 0x12d   : > { %932 = vmatmul.mubr.f32.vlgmr.msra.gmra.mrb[0].mxu1 %v535_v29 }
 0x1ec   : > { %v863_v30 = vpop.f32.mrb[6].mxu0 }
 0x1ed   : > { %v450_v31 = vpop.f32.mrb[7].mxu0 }
 0x200   : > { %v933_v32 = vpop.f32.mrb[0].mxu1 }
 0x201   : > { %v1034_v34 = vadd.f32 %v933_v32, %v863_v30  ;;  %v619_v35 = vpop.f32.mrb[1].mxu1 }
 0x202   : > { %v1035_v36 = vadd.f32 %v619_v35, %v450_v31 }
 0x203   : > { %v639_v37 = vadd.f32 %v1034_v34, %v753_v33 }
 0x204   : > { %v638_v38 = vadd.f32 %v1035_v36, %v753_v33 }
 0x205   : > { %641 = vst [vmem:[%s234_s30 + $0x8] sm:$0xff] %v639_v37 }
 0x206   : > { %640 = vst [vmem:[%s234_s30] sm:$0xff] %v638_v38 }
 0x207 PF: > { %s15_s17 = sadd.s32 1, %s1134_s17   ;;  %s1284_s15 = smov %s1130_s16 }
 0x208   : > { %p12_p4 = scmp.ge.s32.totalorder %s15_s17, 4   ;;  %s1285_s16 = smov %s1287_s19 }
 0x20a   :  { %14 = sbr.rel (!%p12_p4) target bundleno = 2 (0x2), region = 75 }
 0x211   :  { %672 = vsyncpa [#allocation4], 1 }
 0x212   :  { %674 = vsyncpa [#allocation4 + $0x1], 1 }

// kernel: tpu_custom_call.1
= control target key start
LH: loop header
LB: loop body
LE: loop exit
PB: predicated region body
PF: predicated region fallthrough
CT: control target
= control target key end

     0   :  { %9 = vsyncpa [#allocation4], 0  ;;  %s1168_s15 = smov 0   ;;  %s1170_s16 = smov 0   ;;  %s1271_s0 = inlined_call_operand.vmem [shape: f32[2,18,12], index: 0, kind: input, shape index: {}]   ;;  %s1272_s1 = inlined_call_operand.vmem [shape: f32[12,128], index: 1, kind: input, shape index: {}]   ;;  %s1273_s2 = inlined_call_operand.hbm [shape: f32[3,128,128], index: 2, kind: input, shape index: {}]   ;;  %s1274_s3 = inlined_call_operand.vmem [shape: f32[2,1,128], index: 3, kind: input, shape index: {}]   ;;  %s1275_s4 = inlined_call_operand.vmem [shape: f32[2,12,128], index: 4, kind: output, shape index: {}]  }
   0x1   :  { %s1172_s17 = smov 0  }
   0x2 LB: > { %s737_s18 = sadd.s32 4294967295, %s1134_s17   ;;  %s27_s19 = sadd.s32 1, %s1130_s16  ;;  %s1134_s17 = sphi %s1172_s17, %s15_s17   ;;  %s1130_s16 = sphi %s1170_s16, %s1285_s16   ;;  %s1126_s15 = sphi %s1168_s15, %s1284_s15  }
   0x3   : > { %p29_p0 = scmp.ge.s32.totalorder %s27_s19, 2  ;;  %p739_p1 = scmp.ge.s32.totalorder %s1134_s17, 1 }
   0x4   : > { %p149_p2 = scmp.lt.s32.totalorder %s1134_s17, 3  ;;  %p1193_p4 = scmp.eq.s32.totalorder %s737_s18, 0 }
   0x5   : > { %s1287_s19 = smov (%p29_p0, %s27_s19), 0  ;;  %s1136_s22 = smov [#allocation3]  }
   0x6   : > { %p1189_p3 = pnand %p739_p1, %p149_p2  ;;  %s164_s23 = sshll.u32 %s1136_s22, 4  ;;  %s165_s23 = int_to_ptr.vmem [resolvable:$true] %s164_s23 }
   0x7   : > { %s1280_s21 = scalar_select %p1193_p4, 1, 0 }
   0x8   : > { %s1279_s20 = scalar_select %p1189_p3, 1, 0 }
   0x9   : > { %p1043_p5 = pneg %p1189_p3  ;;  %s1080_s27 = scalar_lea.hbm %s1273_s2, 6144 }
   0xa   : > { %p1081_p7 = scmp.ne.s32.totalorder %s1273_s2, %s1080_s27  ;;  %p1087_p11 = scmp.lt.u32.totalorder %s1080_s27, %s1273_s2 }
   0xb   : > { %p1201_p6 = pnand %p1193_p4, %p1043_p5 }
   0xd   : > { %p1082_p8 = pneg %p1201_p6 }
   0xf   : > { %p1083_p9 = pnand %p1082_p8, %p1081_p7 }
  0x11   : > { %p1084_p10 = pneg %p1083_p9 }
  0x13   : > { %p1089_p12 = pnand %p1087_p11, %p1084_p10 }
  0x15   : > { %1092 = shalt.err (!%p1089_p12)
}
  0x16   : > { %s1093_s6 = scalar_lea.vmem %s165_s23, 6144  ;;  %p1101_p2 = scmp.lt.s32.totalorder %s165_s23, %s165_s23 }
  0x17   : > { %p1094_p13 = scmp.ne.s32.totalorder %s165_s23, %s1093_s6  ;;  %p1102_p5 = scmp.lt.s32.totalorder %s1093_s6, %s1093_s6 }
  0x19   : > { %p1096_p0 = pnand %p1094_p13, %p1082_p8  ;;  %p1103_p4 = por %p1102_p5, %p1101_p2 }
  0x1b   : > { %p1097_p1 = pneg %p1096_p0 }
  0x1d   : > { %p1104_p3 = pnand %p1103_p4, %p1097_p1 }
  0x1f   : > { %1107 = shalt.err (!%p1104_p3)
}
  0x20   : > { %s1137_s7 = smov 128   ;;  %s1138_s8 = smov 8  }
  0x21   : > { %1046 = dma.hbm_to_vmem [thread:$0]  (!%p1201_p6), %s1273_s2, 6144, %s165_s23, [#allocation4], %s1137_s7, %s1137_s7, %s1138_s8  }
  0x22   : > { %p1282_p7 = scmp.ne.s32.totalorder %s1279_s20, 0 }
  0x23   : > { %p1283_p9 = scmp.ne.s32.totalorder (!%p1282_p7), %s1280_s21, 0 }
  0x24   : > { %191 = sbr.rel (%p1282_p7) target bundleno = 519 (0x207), region = 36 }
  0x2b   : > { %1121 = dma.done.wait (%p1283_p9), [#allocation4], 6144  }
  0x2c   : > { %1123 = vsyncadd (%p1283_p9), [#allocation4], 4294961152  ;;  %v1139_v0 = vmov 0.0|0.0   ;;  %p221_p3 = scmp.lt.s32.totalorder %s1126_s15, 1  ;;  %vm1140_vm0 = vmmov 0   ;;  %v1141_v1 = vmov 0.0  }
  0x2d   : > { %934 = vmatprep.subr.bf16.mxu0 %v1139_v0  ;;  %820 = vmatprep.mubr.msk.f32.mxu0 %vm1140_vm0, %v1141_v1  ;;  %vm260_vm1 = vcmask 1043456   ;;  %vm1142_vm2 = vmmov 1   ;;  %v241_v2 = vld [vmem:[%s1272_s1] sm:$0xff]  ;;  %v242_v3 = vld [vmem:[%s1272_s1 + $0x8] sm:$0xf]  ;;  %v349_v4 = vld [vmem:[#allocation3] sm:$0xff] }
  0x2e   : > { %s1289_s15 = smov (!%p221_p3, %s1126_s15), 1  ;;  %vm936_vm3 = vmpackc.low %vm260_vm1, %vm1142_vm2  ;;  %v935_v5 = vpack.c.bf16 %v242_v3, %v241_v2  ;;  %v350_v6 = vld [vmem:[#allocation3 + $0x8] sm:$0xff]  ;;  %v351_v7 = vld [vmem:[#allocation3 + $0x10] sm:$0xff]  ;;  %vm250_vm4 = vcmask 97280  }
  0x2f   : > { %s1038_s11 = smul.u32 24, %s1289_s15  ;;  %v352_v8 = vld [vmem:[#allocation3 + $0x18] sm:$0xff]  ;;  %v970_v10 = vpack.c.bf16 %v350_v6, %v349_v4  ;;  %v368_v12 = vld [vmem:[#allocation3 + $0x80] sm:$0xff]  ;;  %v369_v13 = vld [vmem:[#allocation3 + $0x88] sm:$0xff]  ;;  %s756_s25 = sshll.u32 %s1289_s15, 4 }
  0x30   : > { %937 = vmatpush3.bf16.msk.msra.mxu0 %vm936_vm3, %v935_v5  ;;  %v974_v11 = vpack.c.bf16 %v352_v8, %v351_v7  ;;  %v938_v14 = vpack.c.bf16 %v369_v13, %v368_v12  ;;  %v353_v15 = vld [vmem:[#allocation3 + $0x20] sm:$0xff]  ;;  %v354_v16 = vld [vmem:[#allocation3 + $0x28] sm:$0xff]  ;;  %v370_v17 = vld [vmem:[#allocation3 + $0x90] sm:$0xff]  ;;  %s234_s30 = scalar_lea.vmem %s1275_s4, %s756_s25 }
  0x31   : > { %s1242_s22 = scalar_lea.vmem %s1271_s0, %s1038_s11  ;;  %971 = vmatprep.subr.bf16.mxu1 %v970_v10  ;;  %v371_v18 = vld [vmem:[#allocation3 + $0x98] sm:$0xff]  ;;  %v978_v20 = vpack.c.bf16 %v354_v16, %v353_v15  ;;  %v355_v21 = vld [vmem:[#allocation3 + $0x30] sm:$0xff]  ;;  %v372_v24 = vld [vmem:[#allocation3 + $0xa0] sm:$0xff] }
  0x32   : > { %v238_v9 = vld [vmem:[%s1242_s22] sm:$0xff]  ;;  %973 = vmatpush3.bf16.msra.mxu1 %v970_v10  ;;  %v239_v19 = vld [vmem:[%s1242_s22 + $0x8] sm:$0xff]  ;;  %939 = vmatprep.subr.bf16.mxu0 %v938_v14  ;;  %v942_v22 = vpack.c.bf16 %v371_v18, %v370_v17  ;;  %v356_v23 = vld [vmem:[#allocation3 + $0x38] sm:$0xff] }
  0x33   : > { %821 = vmatmul.mubr.msk.f32.vlgmr.msra.gmra.mrb[0].mxu0 %vm250_vm4, %v238_v9  ;;  %975 = vmatprep.subr.bf16.mxu1 %v974_v11  ;;  %v373_v25 = vld [vmem:[#allocation3 + $0xa8] sm:$0xff]  ;;  %v240_v26 = vld [vmem:[%s1242_s22 + $0x10] sm:$0x3]  ;;  %v982_v27 = vpack.c.bf16 %v356_v23, %v355_v21  ;;  %v374_v29 = vld [vmem:[#allocation3 + $0xb0] sm:$0xff] }
  0x34   : > { %823 = vmatprep.mubr.msk.f32.mxu0 %vm1140_vm0, %v1141_v1  ;;  %941 = vmatpush3.bf16.msra.mxu0 %v938_v14  ;;  %v946_v28 = vpack.c.bf16 %v373_v25, %v372_v24  ;;  %v375_v30 = vld [vmem:[#allocation3 + $0xb8] sm:$0xff]  ;;  %v357_v31 = vld [vmem:[#allocation3 + $0x40] sm:$0xff]  ;;  %v358_v32 = vld [vmem:[#allocation3 + $0x48] sm:$0xff] }
  0x35   : > { %943 = vmatprep.subr.bf16.mxu0 %v942_v22  ;;  %v950_v33 = vpack.c.bf16 %v375_v30, %v374_v29  ;;  %v986_v34 = vpack.c.bf16 %v358_v32, %v357_v31  ;;  %v359_v35 = vld [vmem:[#allocation3 + $0x50] sm:$0xff]  ;;  %v360_v36 = vld [vmem:[#allocation3 + $0x58] sm:$0xff]  ;;  %v361_v38 = vld [vmem:[#allocation3 + $0x60] sm:$0xff] }
  0x36   : > { %977 = vmatpush3.bf16.msra.mxu1 %v974_v11  ;;  %v990_v37 = vpack.c.bf16 %v360_v36, %v359_v35  ;;  %v362_v39 = vld [vmem:[#allocation3 + $0x68] sm:$0xff]  ;;  %v363_v41 = vld [vmem:[#allocation3 + $0x70] sm:$0xff]  ;;  %v364_v42 = vld [vmem:[#allocation3 + $0x78] sm:$0xff] }
  0x37   : > { %824 = vmatmul.mubr.msk.f32.gmra.mrb[2].mxu0 %vm250_vm4, %v239_v19  ;;  %979 = vmatprep.subr.bf16.mxu1 %v978_v20  ;;  %v994_v40 = vpack.c.bf16 %v362_v39, %v361_v38  ;;  %v376_v43 = vld [vmem:[#allocation3 + $0xc0] sm:$0xff]  ;;  %v377_v44 = vld [vmem:[#allocation3 + $0xc8] sm:$0xff]  ;;  %v998_v45 = vpack.c.bf16 %v364_v42, %v363_v41  ;;  %v378_v49 = vld [vmem:[#allocation3 + $0xd0] sm:$0xff] }
  0x38   : > { %826 = vmatprep.mubr.msk.f32.mxu0 %vm1140_vm0, %v1141_v1  ;;  %945 = vmatpush3.bf16.msra.mxu0 %v942_v22  ;;  %v954_v46 = vpack.c.bf16 %v377_v44, %v376_v43  ;;  %v537_v47 = vld [vmem:[#allocation3 + $0x100] sm:$0xff]  ;;  %v538_v48 = vld [vmem:[#allocation3 + $0x108] sm:$0xff]  ;;  %v379_v50 = vld [vmem:[#allocation3 + $0xd8] sm:$0xff] }
  0x39   : > { %947 = vmatprep.subr.bf16.mxu0 %v946_v28  ;;  %v1002_v51 = vpack.c.bf16 %v538_v48, %v537_v47  ;;  %v958_v52 = vpack.c.bf16 %v379_v50, %v378_v49  ;;  %v380_v53 = vld [vmem:[#allocation3 + $0xe0] sm:$0xff]  ;;  %v381_v54 = vld [vmem:[#allocation3 + $0xe8] sm:$0xff]  ;;  %v382_v56 = vld [vmem:[#allocation3 + $0xf0] sm:$0xff] }
  0x3a   : > { %981 = vmatpush3.bf16.msra.mxu1 %v978_v20  ;;  %v962_v55 = vpack.c.bf16 %v381_v54, %v380_v53  ;;  %v383_v57 = vld [vmem:[#allocation3 + $0xf8] sm:$0xff]  ;;  %v747_v59 = vld [vmem:[%s1274_s3] ss:$0 sm:$0xff]  ;;  %v539_v63 = vld [vmem:[#allocation3 + $0x110] sm:$0xff] }
  0x3b   : > { %827 = vmatmul.mubr.msk.f32.gmra.mrb[4].mxu0 %vm250_vm4, %v240_v26  ;;  %983 = vmatprep.subr.bf16.mxu1 %v982_v27  ;;  %v966_v58 = vpack.c.bf16 %v383_v57, %v382_v56  ;;  %v540_v0 = vld [vmem:[#allocation3 + $0x118] sm:$0xff]  ;;  %v541_v5 = vld [vmem:[#allocation3 + $0x120] sm:$0xff]  ;;  %v542_v6 = vld [vmem:[#allocation3 + $0x128] sm:$0xff] }
  0x3c   : > { %949 = vmatpush3.bf16.msra.mxu0 %v946_v28  ;;  %v1006_v4 = vpack.c.bf16 %v540_v0, %v539_v63  ;;  %v1010_v9 = vpack.c.bf16 %v542_v6, %v541_v5  ;;  %v543_v11 = vld [vmem:[#allocation3 + $0x130] sm:$0xff]  ;;  %v544_v12 = vld [vmem:[#allocation3 + $0x138] sm:$0xff]  ;;  %v545_v14 = vld [vmem:[#allocation3 + $0x140] sm:$0xff] }
  0x3d   : > { %951 = vmatprep.subr.bf16.mxu0 %v950_v33  ;;  %v1014_v13 = vpack.c.bf16 %v544_v12, %v543_v11  ;;  %v546_v17 = vld [vmem:[#allocation3 + $0x148] sm:$0xff]  ;;  %v547_v20 = vld [vmem:[#allocation3 + $0x150] sm:$0xff]  ;;  %v548_v21 = vld [vmem:[#allocation3 + $0x158] sm:$0xff] }
  0x3e   : > { %985 = vmatpush3.bf16.msra.mxu1 %v982_v27  ;;  %v1018_v18 = vpack.c.bf16 %v546_v17, %v545_v14  ;;  %v1022_v22 = vpack.c.bf16 %v548_v21, %v547_v20  ;;  %v549_v23 = vld [vmem:[#allocation3 + $0x160] sm:$0xff]  ;;  %v550_v24 = vld [vmem:[#allocation3 + $0x168] sm:$0xff]  ;;  %v551_v26 = vld [vmem:[#allocation3 + $0x170] sm:$0xff] }
  0x3f   : > { %987 = vmatprep.subr.bf16.mxu1 %v986_v34  ;;  %v1026_v25 = vpack.c.bf16 %v550_v24, %v549_v23  ;;  %v552_v27 = vld [vmem:[#allocation3 + $0x178] sm:$0xff] }
  0x40   : > { %953 = vmatpush3.bf16.msra.mxu0 %v950_v33  ;;  %v1030_v28 = vpack.c.bf16 %v552_v27, %v551_v26  ;;  %v753_v33 = vld [vmem:[%s1274_s3 + $0x1] ss:$0 sm:$0xff] }
  0x41   : > { %955 = vmatprep.subr.bf16.mxu0 %v954_v46 }
  0x42   : > { %989 = vmatpush3.bf16.msra.mxu1 %v986_v34 }
  0x43   : > { %991 = vmatprep.subr.bf16.mxu1 %v990_v37 }
  0x44   : > { %957 = vmatpush3.bf16.msra.mxu0 %v954_v46 }
  0x45   : > { %959 = vmatprep.subr.bf16.mxu0 %v958_v52 }
  0x46   : > { %993 = vmatpush3.bf16.msra.mxu1 %v990_v37 }
  0x47   : > { %995 = vmatprep.subr.bf16.mxu1 %v994_v40 }
  0x48   : > { %961 = vmatpush3.bf16.msra.mxu0 %v958_v52 }
  0x49   : > { %963 = vmatprep.subr.bf16.mxu0 %v962_v55 }
  0x4a   : > { %997 = vmatpush3.bf16.msra.mxu1 %v994_v40 }
  0x4b   : > { %999 = vmatprep.subr.bf16.mxu1 %v998_v45 }
  0x4c   : > { %965 = vmatpush3.bf16.msra.mxu0 %v962_v55 }
  0x4d   : > { %967 = vmatprep.subr.bf16.mxu0 %v966_v58 }
  0x4e   : > { %1001 = vmatpush3.bf16.msra.mxu1 %v998_v45 }
  0x4f   : > { %1003 = vmatprep.subr.bf16.mxu1 %v1002_v51 }
  0x50   : > { %969 = vmatpush3.bf16.msra.mxu0 %v966_v58 }
 0x106   : > { %v330_v60 = vpop.f32.mrb[0].mxu0 }
 0x107   : > { %v331_v61 = vadd.f32 %v747_v59, %v330_v60  ;;  %v822_v62 = vpop.f32.mrb[1].mxu0 }
 0x109   : > { %344 = vst [vmem:[#allocation2] sm:$0xff] %v331_v61  ;;  %896 = vmatprep.mubr.f32.mxu1 %v331_v61 }
 0x10a   : > { %v335_v1 = vpop.f32.mrb[2].mxu0 }
 0x10b   : > { %v336_v2 = vadd.f32 %v747_v59, %v335_v1  ;;  %v825_v3 = vpop.f32.mrb[3].mxu0 }
 0x10d   : > { %345 = vst [vmem:[#allocation2 + $0x8] sm:$0xff] %v336_v2  ;;  %897 = vmatmul.mubr.f32.vlgmr.msra.gmra.mrb[0].mxu1 %v336_v2 }
 0x10e   : > { %v340_v7 = vpop.f32.mrb[4].mxu0  ;;  %1005 = vmatpush3.bf16.msra.mxu1 %v1002_v51 }
 0x10f   : > { %v341_v8 = vadd.f32 %v747_v59, %v340_v7  ;;  %1007 = vmatprep.subr.bf16.mxu1 %v1006_v4  ;;  %v828_v10 = vpop.f32.mrb[5].mxu0 }
 0x111   : > { %346 = vst [vmem:[#allocation2 + $0x10] sm:$0x3] %v341_v8 }
 0x112   : > { %1009 = vmatpush3.bf16.msra.mxu1 %v1006_v4 }
 0x113   : > { %1011 = vmatprep.subr.bf16.mxu1 %v1010_v9 }
 0x114   : > { %v365_v15 = vld [vmem:[#allocation2 + $0x1] sm:$0xff] }
 0x115   : > { %v534_v16 = vld [vmem:[#allocation2 + $0x2] sm:$0xff]  ;;  %861 = vmatprep.mubr.f32.mxu0 %v365_v15 }
 0x116   : > { %931 = vmatprep.mubr.f32.mxu1 %v534_v16  ;;  %1013 = vmatpush3.bf16.msra.mxu1 %v1010_v9 }
 0x117   : > { %1015 = vmatprep.subr.bf16.mxu1 %v1014_v13 }
 0x118   : > { %v366_v19 = vld [vmem:[#allocation2 + $0x9] sm:$0xff] }
 0x119   : > { %862 = vmatmul.mubr.f32.vlgmr.msra.gmra.mrb[6].mxu0 %v366_v19  ;;  %v535_v29 = vld [vmem:[#allocation2 + $0xa] sm:$0xff] }
 0x11a   : > { %1017 = vmatpush3.bf16.msra.mxu1 %v1014_v13 }
 0x11b   : > { %1019 = vmatprep.subr.bf16.mxu1 %v1018_v18 }
 0x11e   : > { %1021 = vmatpush3.bf16.msra.mxu1 %v1018_v18 }
 0x11f   : > { %1023 = vmatprep.subr.bf16.mxu1 %v1022_v22 }
 0x122   : > { %1025 = vmatpush3.bf16.msra.mxu1 %v1022_v22 }
 0x123   : > { %1027 = vmatprep.subr.bf16.mxu1 %v1026_v25 }
 0x126   : > { %1029 = vmatpush3.bf16.msra.mxu1 %v1026_v25 }
 0x127   : > { %1031 = vmatprep.subr.bf16.mxu1 %v1030_v28 }
 0x12a   : > { %1033 = vmatpush3.bf16.msra.mxu1 %v1030_v28 }
 0x12d   : > { %932 = vmatmul.mubr.f32.vlgmr.msra.gmra.mrb[0].mxu1 %v535_v29 }
 0x1ec   : > { %v863_v30 = vpop.f32.mrb[6].mxu0 }
 0x1ed   : > { %v450_v31 = vpop.f32.mrb[7].mxu0 }
 0x200   : > { %v933_v32 = vpop.f32.mrb[0].mxu1 }
 0x201   : > { %v1034_v34 = vadd.f32 %v933_v32, %v863_v30  ;;  %v619_v35 = vpop.f32.mrb[1].mxu1 }
 0x202   : > { %v1035_v36 = vadd.f32 %v619_v35, %v450_v31 }
 0x203   : > { %v639_v37 = vadd.f32 %v1034_v34, %v753_v33 }
 0x204   : > { %v638_v38 = vadd.f32 %v1035_v36, %v753_v33 }
 0x205   : > { %641 = vst [vmem:[%s234_s30 + $0x8] sm:$0xff] %v639_v37 }
 0x206   : > { %640 = vst [vmem:[%s234_s30] sm:$0xff] %v638_v38 }
 0x207 PF: > { %s15_s17 = sadd.s32 1, %s1134_s17   ;;  %s1284_s15 = smov %s1130_s16 }
 0x208   : > { %p12_p4 = scmp.ge.s32.totalorder %s15_s17, 4   ;;  %s1285_s16 = smov %s1287_s19 }
 0x20a   :  { %14 = sbr.rel (!%p12_p4) target bundleno = 2 (0x2), region = 75 }
 0x211   :  { %672 = vsyncpa [#allocation4], 1 }
 0x212   :  { %674 = vsyncpa [#allocation4 + $0x1], 1 }

</bundles_post_ra>
